<compile_context>
chip_gen: v5e
topology: v5e:2x2
jax: 0.10.0
libtpu: 0.0.40
codegen_flags: <defaults>
</compile_context>

<pallas_src>
import jax
import jax.numpy as jnp
from jax.experimental import pallas as pl
from jax.experimental.pallas import tpu as pltpu

_LANE = 128
_NEG_BIG = -1e30  # softmax padding logit: exp underflows to exactly 0


def _round_up(n, m):
    return ((n + m - 1) // m) * m


def _auto_reply_kernel(x_ref, w_ih_t_ref, b_gates_ref, w_fc_t_ref, b_fc_ref,
                       out_ref):
    h4 = w_ih_t_ref.shape[1]
    hidden = h4 // 4
    mxu_dtype = w_ih_t_ref.dtype

    # x stays f32 in HBM; any narrowing cast happens here (free VPU slots),
    # not as a separate XLA pass in the wrapper.
    x = x_ref[...].astype(mxu_dtype)

    # gates = x @ W_ih^T + (b_ih + b_hh).  h0 @ W_hh^T == 0 (h0 == 0), omitted;
    # b_hh pre-folded.  i/o gate columns were pre-scaled by 0.5 at prep time.
    gates = (jnp.dot(x, w_ih_t_ref[...], preferred_element_type=jnp.float32)
             + b_gates_ref[...])                                   # (TB, 4H) f32

    # Single fused transcendental pass: ONE tanh over the whole gate block.
    #   sigmoid(z) = 0.5 * tanh(z/2) + 0.5   (i/o gates; columns pre-halved)
    #   tanh(z)                              (g gate; column unscaled)
    # Forget gate is dead because c0 == 0.
    t = jnp.tanh(gates)
    i_g = 0.5 * t[:, 0 * hidden:1 * hidden] + 0.5
    g_g = t[:, 2 * hidden:3 * hidden]
    o_g = 0.5 * t[:, 3 * hidden:4 * hidden] + 0.5

    c1 = i_g * g_g                                                 # f*c0 == 0
    h1 = (o_g * jnp.tanh(c1)).astype(mxu_dtype)                    # (TB, H)

    logits = (jnp.dot(h1, w_fc_t_ref[...], preferred_element_type=jnp.float32)
              + b_fc_ref[...])                                     # (TB, O_pad)

    # Exact softmax over the padded lane dim; padded lanes (logit -1e30) -> 0.
    m = jnp.max(logits, axis=-1, keepdims=True)
    e = jnp.exp(logits - m)
    s = jnp.sum(e, axis=-1, keepdims=True)
    out_ref[...] = (e / s).astype(out_ref.dtype)


def prepare_params(params, *, mxu_dtype=jnp.float32):
    """One-time weight prep: transpose, fold biases, pre-halve i/o gate
    columns (for the fused-tanh sigmoid), pad FC to lane-dense 128 outputs.

    mxu_dtype: dtype of the MXU operands (W_ih^T / W_fc^T and the in-kernel
    x/h1 casts).  bf16 is fine on all generations (MXU is bf16-native); all
    gate / softmax arithmetic stays float32 inside the kernel.
    """
    w_ih, w_hh, b_ih, b_hh, w_fc, b_fc = (
        params[k] for k in ("w_ih", "w_hh", "b_ih", "b_hh", "w_fc", "b_fc"))
    hidden = w_hh.shape[1]
    out_size = w_fc.shape[0]
    o_pad = _round_up(max(out_size, _LANE), _LANE)

    # Scale i (cols 0:H) and o (cols 3H:4H) by 0.5 so sigmoid(z)=0.5*tanh(z/2)+0.5
    # comes out of the single fused tanh pass in the kernel.  Exact in f32.
    scale = jnp.ones((1, 4 * hidden), jnp.float32)
    scale = scale.at[:, 0:hidden].set(0.5)
    scale = scale.at[:, 3 * hidden:4 * hidden].set(0.5)

    w_ih_t = (jnp.transpose(w_ih).astype(jnp.float32) * scale).astype(mxu_dtype)
    b_gates = ((b_ih + b_hh).reshape(1, -1).astype(jnp.float32) * scale)  # f32

    w_fc_t = jnp.zeros((hidden, o_pad), mxu_dtype)
    w_fc_t = w_fc_t.at[:, :out_size].set(jnp.transpose(w_fc).astype(mxu_dtype))
    b_fc_p = jnp.full((1, o_pad), _NEG_BIG, jnp.float32)
    b_fc_p = b_fc_p.at[0, :out_size].set(b_fc.astype(jnp.float32))

    return {"w_ih_t": w_ih_t, "b_gates": b_gates,
            "w_fc_t": w_fc_t, "b_fc": b_fc_p,
            "hidden": hidden, "out_size": out_size}


def auto_reply_classifier(x, prep, *, tile_b=None, out_dtype=jnp.float32):
    """x: (batch, input_size) float32. Returns softmax probs
    (batch, output_size) in out_dtype (f32 default; bf16 halves writeback)."""
    w_ih_t, b_gates = prep["w_ih_t"], prep["b_gates"]
    w_fc_t, b_fc = prep["w_fc_t"], prep["b_fc"]
    hidden, out_size = prep["hidden"], prep["out_size"]

    batch = x.shape[0]
    in_size = w_ih_t.shape[0]
    h4 = w_ih_t.shape[1]
    o_pad = w_fc_t.shape[1]

    # Sublane granularity (16 for packed bf16 output rows, else 8).
    sub = 16 if out_dtype == jnp.bfloat16 else 8

    # Batch tile: big tiles amortize the ~0.35 us per-grid-step overhead; aim
    # for >= 2 grid steps so v7x megacore can shard the batch axis.  Even at
    # the 2048 cap the double-buffered x/out tiles are only ~2.3 MiB of VMEM.
    if tile_b is None:
        tile_b = min(2048, max(sub, _round_up(pl.cdiv(batch, 2), sub)))
    tile_b = _round_up(tile_b, sub)
    b_pad = _round_up(max(batch, tile_b), tile_b)

    # NOTE: no dtype cast here (that would be a separate un-hidden XLA pass
    # over x); the kernel casts the tile to the MXU dtype itself.
    if b_pad != batch:
        x = jnp.pad(x, ((0, b_pad - batch), (0, 0)))  # zero rows: harmless

    grid = (b_pad // tile_b,)
    out = pl.pallas_call(
        _auto_reply_kernel,
        out_shape=jax.ShapeDtypeStruct((b_pad, o_pad), out_dtype),
        grid=grid,
        in_specs=[
            pl.BlockSpec((tile_b, in_size), lambda b: (b, 0)),   # x tile
            pl.BlockSpec((in_size, h4), lambda b: (0, 0)),       # W_ih^T (resident)
            pl.BlockSpec((1, h4), lambda b: (0, 0)),             # b_ih + b_hh (scaled)
            pl.BlockSpec((hidden, o_pad), lambda b: (0, 0)),     # W_fc^T (padded)
            pl.BlockSpec((1, o_pad), lambda b: (0, 0)),          # b_fc (padded)
        ],
        out_specs=pl.BlockSpec((tile_b, o_pad), lambda b: (b, 0)),
        compiler_params=pltpu.CompilerParams(
            dimension_semantics=("parallel",)),  # megacore-shardable batch axis
    )(x, w_ih_t, b_gates, w_fc_t, b_fc)

    return out[:batch, :out_size]


def init_params(key, input_size, hidden_size, output_size):
    """Deterministic synthetic init, shapes matching nn.LSTM / nn.Linear."""
    ks = jax.random.split(key, 6)
    k = 1.0 / jnp.sqrt(hidden_size)
    u = lambda kk, shape: jax.random.uniform(kk, shape, jnp.float32, -k, k)
    return {
        "w_ih": u(ks[0], (4 * hidden_size, input_size)),
        "w_hh": u(ks[1], (4 * hidden_size, hidden_size)),
        "b_ih": u(ks[2], (4 * hidden_size,)),
        "b_hh": u(ks[3], (4 * hidden_size,)),
        "w_fc": u(ks[4], (output_size, hidden_size)),
        "b_fc": u(ks[5], (output_size,)),
    }


def _reference(x, p):
    """Pure-JAX reference of the PyTorch forward (seq_len=1, zero state)."""
    H = p["w_hh"].shape[1]
    h0 = jnp.zeros((x.shape[0], H), jnp.float32)
    c0 = jnp.zeros((x.shape[0], H), jnp.float32)
    gates = x @ p["w_ih"].T + p["b_ih"] + h0 @ p["w_hh"].T + p["b_hh"]
    i = jax.nn.sigmoid(gates[:, 0 * H:1 * H])
    f = jax.nn.sigmoid(gates[:, 1 * H:2 * H])
    g = jnp.tanh(gates[:, 2 * H:3 * H])
    o = jax.nn.sigmoid(gates[:, 3 * H:4 * H])
    c1 = f * c0 + i * g
    h1 = o * jnp.tanh(c1)
    logits = h1 @ p["w_fc"].T + p["b_fc"]
    return jax.nn.softmax(logits, axis=-1)


if __name__ == "__main__":
    batch, input_size, hidden_size, output_size = 20, 16, 32, 8

    key = jax.random.PRNGKey(0)
    k_x, k_p = jax.random.split(key)
    x = jax.random.normal(k_x, (batch, input_size), dtype=jnp.float32)
    params = init_params(k_p, input_size, hidden_size, output_size)
    ref = _reference(x, params)

    # 1) f32 path, forced small tile (tile_b=8 -> batch padded 20->24, grid=(3,))
    #    to exercise the batch grid + padding + output-lane slicing.
    prep_f32 = prepare_params(params, mxu_dtype=jnp.float32)
    out_f32 = jax.block_until_ready(auto_reply_classifier(x, prep_f32, tile_b=8))
    assert out_f32.shape == (batch, output_size)
    # Exact softmax normalization (no approx reciprocal anymore).
    assert jnp.allclose(jnp.sum(out_f32, axis=-1), 1.0, atol=1e-5)
    err = float(jnp.max(jnp.abs(out_f32 - ref)))
    assert err < 2e-3, err  # headroom for TPU default-precision matmul passes

    # 2) bf16 MXU-operand path, auto tile (>=2 grid steps): f32 gate/softmax math.
    prep_bf16 = prepare_params(params, mxu_dtype=jnp.bfloat16)
    out_bf16 = jax.block_until_ready(auto_reply_classifier(x, prep_bf16))
    assert out_bf16.shape == (batch, output_size)
    err = float(jnp.max(jnp.abs(out_bf16 - ref)))
    assert err < 1e-2, err

    # 3) bf16 output slab (halved HBM writeback), f32 weights/math inside.
    out_bf16o = jax.block_until_ready(
        auto_reply_classifier(x, prep_f32, out_dtype=jnp.bfloat16))
    assert out_bf16o.shape == (batch, output_size)
    err = float(jnp.max(jnp.abs(out_bf16o.astype(jnp.float32) - ref)))
    assert err < 1e-2, err

    print("KERNEL_OK")
</pallas_src>

<mosaic_0001>
module attributes {stable_mosaic.version = 11 : i64} {
  func.func @_auto_reply_kernel(%arg0: i32, %arg1: memref<8x16xf32, #tpu.memory_space<vmem>>, %arg2: memref<16x128xf32, #tpu.memory_space<vmem>>, %arg3: memref<1x128xf32, #tpu.memory_space<vmem>>, %arg4: memref<32x128xf32, #tpu.memory_space<vmem>>, %arg5: memref<1x128xf32, #tpu.memory_space<vmem>>, %arg6: memref<8x128xf32, #tpu.memory_space<vmem>>) attributes {dimension_semantics = [#tpu.dimension_semantics<parallel>], iteration_bounds = array<i64: 3>, scalar_prefetch = 0 : i64, scratch_operands = 0 : i64, tpu.core_type = #tpu.core_type<tc>, window_params = [{transform_indices = @transform_0, window_bounds = array<i64: 8, 16>}, {pipeline_mode = #tpu.pipeline_mode<synchronous>, transform_indices = @transform_1, window_bounds = array<i64: 16, 128>}, {pipeline_mode = #tpu.pipeline_mode<synchronous>, transform_indices = @transform_2, window_bounds = array<i64: 1, 128>}, {pipeline_mode = #tpu.pipeline_mode<synchronous>, transform_indices = @transform_3, window_bounds = array<i64: 32, 128>}, {pipeline_mode = #tpu.pipeline_mode<synchronous>, transform_indices = @transform_4, window_bounds = array<i64: 1, 128>}, {transform_indices = @transform_5, window_bounds = array<i64: 8, 128>}]} {
    %c0 = arith.constant 0 : index
    %c0_0 = arith.constant 0 : index
    %0 = vector.load %arg1[%c0, %c0_0] : memref<8x16xf32, #tpu.memory_space<vmem>>, vector<8x16xf32>
    %c0_1 = arith.constant 0 : index
    %c0_2 = arith.constant 0 : index
    %1 = vector.load %arg2[%c0_1, %c0_2] : memref<16x128xf32, #tpu.memory_space<vmem>>, vector<16x128xf32>
    %cst = arith.constant dense<0.000000e+00> : vector<8x128xf32>
    %2 = tpu.matmul %0, %1, %cst {dimension_numbers = #tpu.dot_dimension_numbers<[1], [0], [0], [1], [0, 0, 1, 1], [], []>} : vector<8x16xf32>, vector<16x128xf32>, vector<8x128xf32> -> vector<8x128xf32>
    %c0_3 = arith.constant 0 : index
    %c0_4 = arith.constant 0 : index
    %3 = vector.load %arg3[%c0_3, %c0_4] : memref<1x128xf32, #tpu.memory_space<vmem>>, vector<1x128xf32>
    %4 = vector.broadcast %3 : vector<1x128xf32> to vector<8x128xf32>
    %5 = arith.addf %2, %4 : vector<8x128xf32>
    %6 = math.tanh %5 : vector<8x128xf32>
    %7 = vector.extract_strided_slice %6 {offsets = [0, 0], sizes = [8, 32], strides = [1, 1]} : vector<8x128xf32> to vector<8x32xf32>
    %cst_5 = arith.constant 5.000000e-01 : f32
    %8 = vector.broadcast %cst_5 : f32 to vector<8x32xf32>
    %9 = arith.mulf %8, %7 : vector<8x32xf32>
    %cst_6 = arith.constant 5.000000e-01 : f32
    %10 = vector.broadcast %cst_6 : f32 to vector<8x32xf32>
    %11 = arith.addf %9, %10 : vector<8x32xf32>
    %12 = vector.extract_strided_slice %6 {offsets = [0, 64], sizes = [8, 32], strides = [1, 1]} : vector<8x128xf32> to vector<8x32xf32>
    %13 = vector.extract_strided_slice %6 {offsets = [0, 96], sizes = [8, 32], strides = [1, 1]} : vector<8x128xf32> to vector<8x32xf32>
    %cst_7 = arith.constant 5.000000e-01 : f32
    %14 = vector.broadcast %cst_7 : f32 to vector<8x32xf32>
    %15 = arith.mulf %14, %13 : vector<8x32xf32>
    %cst_8 = arith.constant 5.000000e-01 : f32
    %16 = vector.broadcast %cst_8 : f32 to vector<8x32xf32>
    %17 = arith.addf %15, %16 : vector<8x32xf32>
    %18 = arith.mulf %11, %12 : vector<8x32xf32>
    %19 = math.tanh %18 : vector<8x32xf32>
    %20 = arith.mulf %17, %19 : vector<8x32xf32>
    %c0_9 = arith.constant 0 : index
    %c0_10 = arith.constant 0 : index
    %21 = vector.load %arg4[%c0_9, %c0_10] : memref<32x128xf32, #tpu.memory_space<vmem>>, vector<32x128xf32>
    %cst_11 = arith.constant dense<0.000000e+00> : vector<8x128xf32>
    %22 = tpu.matmul %20, %21, %cst_11 {dimension_numbers = #tpu.dot_dimension_numbers<[1], [0], [0], [1], [0, 0, 1, 1], [], []>} : vector<8x32xf32>, vector<32x128xf32>, vector<8x128xf32> -> vector<8x128xf32>
    %c0_12 = arith.constant 0 : index
    %c0_13 = arith.constant 0 : index
    %23 = vector.load %arg5[%c0_12, %c0_13] : memref<1x128xf32, #tpu.memory_space<vmem>>, vector<1x128xf32>
    %24 = vector.broadcast %23 : vector<1x128xf32> to vector<8x128xf32>
    %25 = arith.addf %22, %24 : vector<8x128xf32>
    %cst_14 = arith.constant dense<0xFF800000> : vector<8xf32>
    %26 = vector.multi_reduction <maximumf>, %25, %cst_14 [1] : vector<8x128xf32> to vector<8xf32>
    %27 = vector.shape_cast %26 : vector<8xf32> to vector<8x1xf32>
    %28 = vector.broadcast %27 : vector<8x1xf32> to vector<8x128xf32>
    %29 = arith.subf %25, %28 : vector<8x128xf32>
    %30 = math.exp %29 : vector<8x128xf32>
    %cst_15 = arith.constant dense<0.000000e+00> : vector<8xf32>
    %31 = vector.multi_reduction <add>, %30, %cst_15 [1] : vector<8x128xf32> to vector<8xf32>
    %32 = vector.shape_cast %31 : vector<8xf32> to vector<8x1xf32>
    %33 = vector.broadcast %32 : vector<8x1xf32> to vector<8x128xf32>
    %34 = arith.divf %30, %33 : vector<8x128xf32>
    %c0_16 = arith.constant 0 : index
    %c0_17 = arith.constant 0 : index
    %35 = vector.load %arg6[%c0_16, %c0_17] : memref<8x128xf32, #tpu.memory_space<vmem>>, vector<8x128xf32>
    tpu.vector_store %arg6[%c0_16, %c0_17], %34 {strides = array<i32>} : memref<8x128xf32, #tpu.memory_space<vmem>>, vector<8x128xf32>,
    return
  }
  func.func @transform_0(%arg0: i32) -> (i32, i32) {
    %c0_i32 = arith.constant 0 : i32
    %c0_i32_0 = arith.constant 0 : i32
    return %arg0, %c0_i32 : i32, i32
  }
  func.func @transform_1(%arg0: i32) -> (i32, i32) {
    %c0_i32 = arith.constant 0 : i32
    %c0_i32_0 = arith.constant 0 : i32
    %c0_i32_1 = arith.constant 0 : i32
    return %c0_i32, %c0_i32_0 : i32, i32
  }
  func.func @transform_2(%arg0: i32) -> (i32, i32) {
    %c0_i32 = arith.constant 0 : i32
    %c0_i32_0 = arith.constant 0 : i32
    %c0_i32_1 = arith.constant 0 : i32
    return %c0_i32, %c0_i32_0 : i32, i32
  }
  func.func @transform_3(%arg0: i32) -> (i32, i32) {
    %c0_i32 = arith.constant 0 : i32
    %c0_i32_0 = arith.constant 0 : i32
    %c0_i32_1 = arith.constant 0 : i32
    return %c0_i32, %c0_i32_0 : i32, i32
  }
  func.func @transform_4(%arg0: i32) -> (i32, i32) {
    %c0_i32 = arith.constant 0 : i32
    %c0_i32_0 = arith.constant 0 : i32
    %c0_i32_1 = arith.constant 0 : i32
    return %c0_i32, %c0_i32_0 : i32, i32
  }
  func.func @transform_5(%arg0: i32) -> (i32, i32) {
    %c0_i32 = arith.constant 0 : i32
    %c0_i32_0 = arith.constant 0 : i32
    return %arg0, %c0_i32 : i32, i32
  }
}

</mosaic_0001>

<bundles_post_ra>
// kernel: tpu_custom_call.1
= control target key start
LH: loop header
LB: loop body
LE: loop exit
PB: predicated region body
PF: predicated region fallthrough
CT: control target
= control target key end

     0   :  { %10 = vsyncpa [#allocation3], 0  ;;  %s752_s0 = inlined_call_operand.vmem [shape: f32[24,16], index: 0, kind: input, shape index: {}]   ;;  %s753_s1 = inlined_call_operand.hbm [shape: f32[16,128], index: 1, kind: input, shape index: {}]   ;;  %s754_s2 = inlined_call_operand.vmem [shape: f32[1,128], index: 2, kind: input, shape index: {}]   ;;  %s755_s3 = inlined_call_operand.vmem [shape: f32[32,128], index: 3, kind: input, shape index: {}]   ;;  %s756_s4 = inlined_call_operand.vmem [shape: f32[1,128], index: 4, kind: input, shape index: {}]   ;;  %s757_s5 = inlined_call_operand.hbm [shape: f32[24,128], index: 5, kind: output, shape index: {}]  }
   0x1   :  { %11 = vsyncpa [#allocation4], 0 }
   0x2   :  { %13 = vsyncpa [#allocation4 + $0x1], 0  ;;  %s639_s18 = smov 0   ;;  %s641_s19 = smov 0  }
   0x3   :  { %s643_s20 = smov 0   ;;  %s645_s21 = smov 0  }
   0x4 LB: > { %s660_s22 = sadd.s32 4294967295, %s601_s21   ;;  %s426_s23 = sadd.s32 4294967294, %s601_s21   ;;  %s601_s21 = sphi %s645_s21, %s763_s21   ;;  %s597_s20 = sphi %s643_s20, %s762_s20   ;;  %s593_s19 = sphi %s641_s19, %s761_s19   ;;  %s589_s18 = sphi %s639_s18, %s760_s18  }
   0x5   : > { %s664_s24 = sadd.s32 1, %s601_s21   ;;  %s136_s25 = sadd.s32 1, %s597_s20 }
   0x6   : > { %s133_s26 = ssub.s32 %s601_s21, %s664_s24  ;;  %p146_p0 = scmp.ne.s32.totalorder %s597_s20, %s593_s19 }
   0x7   : > { %p134_p1 = scmp.eq.s32.totalorder %s133_s26, 0  ;;  %p147_p2 = scmp.eq.s32.totalorder %s660_s22, 2 }
   0x8   : > { %p152_p3 = scmp.ne.s32.totalorder %s593_s19, %s589_s18  ;;  %p153_p4 = scmp.eq.s32.totalorder %s426_s23, 2 }
   0x9   : > { %s675_s27 = scalar_select %p134_p1, %s597_s20, %s136_s25  }
   0xa   : > { %p677_p5 = por %p147_p2, %p146_p0  ;;  %p681_p6 = por %p153_p4, %p152_p3 }
   0xb   : > { %p427_p7 = scmp.ge.s32.totalorder %s601_s21, 1  ;;  %p160_p8 = scmp.lt.s32.totalorder %s601_s21, 4 }
   0xc   : > { %p454_p9 = scmp.eq.s32.totalorder %s660_s22, 0  ;;  %s171_s7 = sshll.u32 %s753_s1, 4  ;;  %s172_s7 = int_to_ptr.hbm [resolvable:$true] %s171_s7 }
   0xd   : > { %p161_p10 = pnand %p427_p7, %p160_p8  ;;  %s603_s8 = smov [#allocation2]  }
   0xe   : > { %s173_s9 = sshll.u32 %s603_s8, 4  ;;  %s604_s10 = smov 128   ;;  %s174_s9 = int_to_ptr.vmem [resolvable:$true] %s173_s9 }
   0xf   : > { %p446_p11 = pneg %p161_p10  ;;  %s605_s11 = smov 8  }
  0x10   : > { %205 = sbr.rel (%p161_p10) target bundleno = 913 (0x391), region = 40 }
  0x11   : > { %p447_p12 = pnand %p454_p9, %p446_p11 }
  0x13   : > { %449 = dma.hbm_to_vmem [thread:$0]  (!%p447_p12), %s172_s7, 256, %s174_s9, [#allocation3], %s604_s10, %s604_s10, %s605_s11  }
  0x15   : > { %580 = dma.done.wait (%p454_p9), [#allocation3], 256  }
  0x16   : > { %582 = vsyncadd (%p454_p9), [#allocation3], 4294967040  ;;  %p233_p13 = scmp.lt.s32.totalorder %s660_s22, 2  ;;  %v239_v0 = vld [vmem:[#allocation2 + $0x8] sm:$0xff]  ;;  %v238_v1 = vld [vmem:[#allocation2] sm:$0xff]  ;;  %vm244_vm0 = vcmask 130048  }
  0x17   : > { %262 = vmatpush.msra.mxu0 %v239_v0  ;;  %v495_v3 = vld [vmem:[%s754_s2] ss:$0 sm:$0xff]  ;;  %s606_s25 = smov 64   ;;  %s607_s26 = smov 96   ;;  %v285_v12 = vld [vmem:[%s755_s3 + $0x18] sm:$0xff]  ;;  %v284_v13 = vld [vmem:[%s755_s3 + $0x10] sm:$0xff] }
  0x18   : > { %s234_s12 = scalar_select %p233_p13, %s660_s22, 2  ;;  %308 = vmatpush.msra.mxu1 %v285_v12  ;;  %v283_v14 = vld [vmem:[%s755_s3 + $0x8] sm:$0xff]  ;;  %v282_v15 = vld [vmem:[%s755_s3] sm:$0xff]  ;;  %vm293_vm1 = vcmask 261120  }
  0x19   : > { %263 = vmatpush.msra.mxu0 %v238_v1  ;;  %v496_v19 = vld [vmem:[%s756_s4] ss:$0 sm:$0xff]  ;;  %s437_s23 = sshll.u32 %s660_s22, 3 }
  0x1a   : > { %s433_s13 = sshll.u32 %s234_s12, 3  ;;  %309 = vmatpush.msra.mxu1 %v284_v13  ;;  %s350_s30 = scalar_lea.hbm %s757_s5, %s437_s23 }
  0x1b   : > { %s236_s16 = scalar_lea.vmem %s752_s0, %s433_s13  ;;  %s608_s13 = smov 32  }
  0x1c   : > { %v237_v2 = vld [vmem:[%s236_s16] sm:$0xff]  ;;  %310 = vmatpush.msra.mxu1 %v283_v14  ;;  %s230_s16 = sand.u32 1, %s593_s19   ;;  %s354_s8 = sshll.u32 %s350_s30, 4  ;;  %s355_s8 = int_to_ptr.hbm [resolvable:$true] %s354_s8 }
  0x1d   : > { %434 = vmatmul.msk.f32.vlgmr.msra.gmra.mxu0 %vm244_vm0, %v237_v2  ;;  %s432_s17 = sshll.u32 %s230_s16, 3  ;;  %s340_s22 = scalar_lea.sflag [#allocation4], %s230_s16 }
  0x1e   : > { %311 = vmatpush.msra.mxu1 %v282_v15  ;;  %s232_s6 = scalar_lea.vmem [#allocation5], %s432_s17  ;;  %s549_s9 = sshra.s32 %s355_s8, 4  ;;  %s550_s9 = int_to_ptr.hbm [resolvable:$true] %s549_s9 }
  0x1f   : > { %s352_s7 = sshll.u32 %s232_s6, 4  ;;  %s551_s10 = scalar_lea.hbm %s550_s9, 8  ;;  %s353_s7 = int_to_ptr.vmem [resolvable:$true] %s352_s7 }
  0x20   : > { %p552_p0 = scmp.ne.s32.totalorder %s550_s9, %s551_s10  ;;  %p556_p3 = scmp.lt.s32.totalorder %s550_s9, %s757_s5 }
  0x22   : > { %p553_p1 = pnand %p552_p0, %p677_p5 }
  0x24   : > { %p554_p2 = pneg %p553_p1 }
  0x9a   : > { %v265_v4 = vpop.f32.mrf.mxu0 }
  0x9b   : > { %v266_v5 = vadd.f32 %v495_v3, %v265_v4 }
  0x9d   : > { %497 = vtanh.f32 %v266_v5 }
  0xa3   : > { %v498_v6 = vpop.eup %497 }
  0xa4   : > { %272 = vrot.lane.b32.xlu0 %v498_v6, %s606_s25  ;;  %v269_v7 = vmul.f32 0.5, %v498_v6 }
  0xa6   : > { %v270_v8 = vadd.f32 0.5, %v269_v7 }
 0x116   : > { %v273_v9 = vpop.permute.xlu0 %272 }
 0x117   : > { %v275_v10 = vmul.f32 %v273_v9, %v270_v8 }
 0x119   : > { %499 = vtanh.f32 %v275_v10 }
 0x11f   : > { %v500_v11 = vpop.eup %499 }
 0x120   : > { %278 = vrot.lane.b32.xlu0 %v500_v11, %s607_s26 }
 0x192   : > { %v279_v16 = vpop.permute.xlu0 %278 }
 0x193   : > { %v281_v17 = vmul.f32 %v279_v16, %v270_v8 }
 0x195   : > { %291 = vrot.lane.b32.xlu1 %v281_v17, %s608_s13  ;;  %s555_s13 = scalar_lea.hbm %s757_s5, 24 }
 0x196   : > { %p557_p4 = scmp.lt.s32.totalorder %s555_s13, %s551_s10 }
 0x198   : > { %p558_p7 = por %p557_p4, %p556_p3 }
 0x19a   : > { %p559_p8 = pnand %p558_p7, %p554_p2 }
 0x207   : > { %v292_v18 = vpop.permute.xlu1 %291 }
 0x208   : > { %435 = vmatmul.msk.f32.vlgmr.msra.gmra.mxu1 %vm293_vm1, %v292_v18 }
 0x285   : > { %v313_v20 = vpop.f32.mrf.mxu1 }
 0x286   : > { %v314_v21 = vadd.f32 %v496_v19, %v313_v20 }
 0x288   : > { %316 = vmax.xlane.f32.xlu1 %v314_v21 }
 0x2fb   : > { %v317_v22 = vpop.xlane.xlu1 %316 }
 0x2fc   : > { %v318_v23 = vsub.f32 %v314_v21, %v317_v22 }
 0x2fe   : > { %v319_v24 = vmul.f32 1.442695, %v318_v23 }
 0x300   : > { %501 = vpow2.f32 %v319_v24 }
 0x306   : > { %v502_v25 = vpop.eup %501 }
 0x307   : > { %321 = vadd.xlane.f32.xlu2 %v502_v25 }
 0x37a   : > { %v322_v26 = vpop.xlane.xlu2 %321 }
 0x37b   : > { %503 = vrcp.f32 %v322_v26  ;;  %v334_v30 = vand.u32 2147483648, %v322_v26  ;;  %v332_v32 = vand.u32 2147483647, %v322_v26  ;;  %vm328_vm3 = vweird.f32 %v322_v26 }
 0x37d   : > { %v335_v34 = vor.u32 1.1754944e-38, %v334_v30  ;;  %vm333_vm5 = vcmp.eq.f32.partialorder %v332_v32, 8.507059e+37 }
 0x381   : > { %v504_v27 = vpop.eup %503 }
 0x382   : > { %v324_v28 = vmul.f32 %v504_v27, %v322_v26  ;;  %vm329_vm2 = vweird.f32 %v504_v27 }
 0x383   : > { %vm330_vm4 = vmor %vm328_vm3, %vm329_vm2 }
 0x384   : > { %v325_v29 = vsub.f32 1.0, %v324_v28 }
 0x386   : > { %v326_v31 = vmul.f32 %v504_v27, %v325_v29 }
 0x388   : > { %v327_v33 = vadd.f32 %v504_v27, %v326_v31 }
 0x38a   : > { %v331_v35 = vsel %vm330_vm4, %v504_v27, %v327_v33 }
 0x38b   : > { %v336_v36 = vsel %vm333_vm5, %v335_v34, %v331_v35 }
 0x38c   : > { %v337_v37 = vmul.f32 %v502_v25, %v336_v36 }
 0x38e   : > { %338 = vst [vmem:[%s232_s6] sm:$0xff] %v337_v37 }
 0x38f   : > { %562 = shalt.err (!%p559_p8)
}
 0x390   : > { %444 = dma.vmem_to_hbm [thread:$0]  (%p677_p5), %s353_s7, 128, %s355_s8, %s340_s22  }
 0x391 PF: > { %p456_p9 = scmp.ge.s32.totalorder %s601_s21, 2  ;;  %s366_s16 = sand.u32 1, %s589_s18  }
 0x392   : > { %s367_s17 = scalar_lea.sflag [#allocation4], %s366_s16 }
 0x393   : > { %p451_p10 = pnand %p456_p9, %p681_p6 }
 0x395   : > { %p452_p11 = pneg %p451_p10 }
 0x397   : > { %584 = dma.done.wait (%p452_p11), %s367_s17, 128  }
 0x398   : > { %586 = vsyncadd (%p452_p11), %s367_s17, 4294967168  ;;  %p16_p12 = scmp.ge.s32.totalorder %s664_s24, 5   ;;  %s760_s18 = smov %s593_s19 }
 0x399   : > { %s761_s19 = smov %s597_s20  ;;  %s762_s20 = smov %s675_s27 }
 0x39a   : > { %s763_s21 = smov %s664_s24  ;;  %18 = sbr.rel (!%p16_p12) target bundleno = 4 (0x4), region = 80 }
 0x39f   :  { %373 = vsyncpa [#allocation3], 1 }
 0x3a0   :  { %375 = vsyncpa [#allocation3 + $0x1], 1 }
 0x3a1   :  { %376 = vsyncpa [#allocation4], 1 }
 0x3a2   :  { %378 = vsyncpa [#allocation4 + $0x1], 1 }

</bundles_post_ra>
